<compile_context>
chip_gen: v7x
topology: tpu7x:2x2x1
jax: 0.10.0
libtpu: 0.0.40
codegen_flags: <defaults>
</compile_context>

<pallas_src>
import functools

import jax
import jax.numpy as jnp
from jax.experimental import pallas as pl
from jax.experimental.pallas import tpu as pltpu

EPS = 1e-5
_SLACK = 2 << 20        # VMEM slack for params / semaphores / misc
_F32_TEMPS = 2          # full-block f32 temporaries live inside the fused kernel


# --------------------------------------------------------------------------
# Sizing helpers
# --------------------------------------------------------------------------
def _granule(dtype):
    """Channel-tile granularity: sub-32-bit dtypes pack along sublanes."""
    size = jnp.dtype(dtype).itemsize
    if size >= 4:
        return 8
    if size == 2:
        return 16
    return 32


def _vmem_capacity_bytes():
    try:
        return int(pltpu.get_tpu_info().vmem_capacity_bytes)
    except Exception:
        return 64 << 20  # be conservative if the query is unavailable


def _total_vmem_budget():
    cap = _vmem_capacity_bytes()
    if cap <= (64 << 20):        # v7x-class: 64 MiB per TensorCore
        return 40 << 20
    return 96 << 20              # v5e / v6e: 128 MiB


def _block_footprint(n_blk, c_blk, hw_blk, itemsize):
    """Total VMEM for one pipelined block: in+out double-buffered in the input
    dtype, plus the in-kernel f32 temporaries, plus slack."""
    elems = n_blk * c_blk * hw_blk
    return 4 * elems * itemsize + _F32_TEMPS * elems * 4 + _SLACK


# --------------------------------------------------------------------------
# Path A: one grid step owns a full (N, c_tile, HW) channel group
# --------------------------------------------------------------------------
def _fused_kernel(x_ref, gamma_ref, beta_ref, o_ref, *, c_tile):
    # x_ref: (N, c_tile, HW); gamma_ref/beta_ref: full (C, 1), resident in VMEM.
    x = x_ref[...].astype(jnp.float32)
    inv_count = 1.0 / float(x.shape[0] * x.shape[2])

    # Single-pass per-channel stats in f32 (no (x - mean) temporary).
    s1 = jnp.sum(x, axis=(0, 2), keepdims=True)            # (1, c_tile, 1)
    s2 = jnp.sum(x * x, axis=(0, 2), keepdims=True)
    mean = s1 * inv_count
    var = jnp.maximum(s2 * inv_count - mean * mean, 0.0)    # clamp cancellation
    inv = jax.lax.rsqrt(var + EPS)

    c_total = gamma_ref.shape[0]
    if c_tile == c_total:                                   # single group
        g = gamma_ref[...]
        b = beta_ref[...]
    else:                                                   # slice resident params
        start = pl.multiple_of(pl.program_id(0) * c_tile, 8)
        g = gamma_ref[pl.ds(start, c_tile), :]
        b = beta_ref[pl.ds(start, c_tile), :]
    g = g.astype(jnp.float32)[None, :, :]
    b = b.astype(jnp.float32)[None, :, :]

    # Fold affine into one per-channel scale/shift -> one fused mul-add per elt.
    scale = inv * g
    shift = b - mean * scale
    o_ref[...] = (x * scale + shift).astype(o_ref.dtype)


def _run_fused(x3, g2, b2, c_tile, vmem_limit):
    N, C, HW = x3.shape
    itemsize = x3.dtype.itemsize
    cost = pl.CostEstimate(
        flops=8 * x3.size,
        transcendentals=C,
        bytes_accessed=2 * x3.size * itemsize + 2 * C * itemsize,
    )
    return pl.pallas_call(
        functools.partial(_fused_kernel, c_tile=c_tile),
        out_shape=jax.ShapeDtypeStruct((N, C, HW), x3.dtype),
        grid=(C // c_tile,),
        in_specs=[
            pl.BlockSpec((N, c_tile, HW), lambda i: (0, i, 0)),
            pl.BlockSpec((C, 1), lambda i: (0, 0)),   # resident, sliced in-kernel
            pl.BlockSpec((C, 1), lambda i: (0, 0)),
        ],
        out_specs=pl.BlockSpec((N, c_tile, HW), lambda i: (0, i, 0)),
        compiler_params=pltpu.CompilerParams(
            dimension_semantics=("parallel",),
            vmem_limit_bytes=int(vmem_limit),
        ),
        cost_estimate=cost,
    )(x3, g2, b2)


# --------------------------------------------------------------------------
# Path B: two-pass fallback with a chunked reduction axis
# --------------------------------------------------------------------------
def _stats_kernel(x_ref, gamma_ref, beta_ref, scale_ref, shift_ref,
                  s1_ref, s2_ref, *, inv_count):
    k = pl.program_id(1)

    @pl.when(k == 0)
    def _():
        s1_ref[...] = jnp.zeros_like(s1_ref)
        s2_ref[...] = jnp.zeros_like(s2_ref)

    x = x_ref[...].astype(jnp.float32)
    s1_ref[...] += jnp.sum(x, axis=(0, 2), keepdims=True)
    s2_ref[...] += jnp.sum(x * x, axis=(0, 2), keepdims=True)

    @pl.when(k == pl.num_programs(1) - 1)
    def _():
        mean = s1_ref[...] * inv_count
        var = jnp.maximum(s2_ref[...] * inv_count - mean * mean, 0.0)
        inv = jax.lax.rsqrt(var + EPS)
        g = gamma_ref[...].astype(jnp.float32)
        b = beta_ref[...].astype(jnp.float32)
        scale = inv * g
        scale_ref[...] = scale
        shift_ref[...] = b - mean * scale


def _normalize_kernel(x_ref, scale_ref, shift_ref, o_ref):
    x = x_ref[...].astype(jnp.float32)
    o_ref[...] = (x * scale_ref[...] + shift_ref[...]).astype(o_ref.dtype)


def _run_two_pass(x3, g3, b3, c_tile, split_hw, n_blk, hw_blk, vmem_limit):
    N, C, HW = x3.shape
    itemsize = x3.dtype.itemsize
    c_groups = C // c_tile
    if split_hw:
        k_steps = HW // hw_blk
        blk = (N, c_tile, hw_blk)
        x_map = lambda i, k: (0, i, k)
    else:
        k_steps = N // n_blk
        blk = (n_blk, c_tile, HW)
        x_map = lambda i, k: (k, i, 0)
    cmap = lambda i, k: (0, i, 0)
    inv_count = 1.0 / float(N * HW)

    scale, shift = pl.pallas_call(
        functools.partial(_stats_kernel, inv_count=inv_count),
        out_shape=(jax.ShapeDtypeStruct((1, C, 1), jnp.float32),
                   jax.ShapeDtypeStruct((1, C, 1), jnp.float32)),
        grid=(c_groups, k_steps),
        in_specs=[
            pl.BlockSpec(blk, x_map),
            pl.BlockSpec((1, c_tile, 1), cmap),
            pl.BlockSpec((1, c_tile, 1), cmap),
        ],
        out_specs=(pl.BlockSpec((1, c_tile, 1), cmap),
                   pl.BlockSpec((1, c_tile, 1), cmap)),
        scratch_shapes=[pltpu.VMEM((1, c_tile, 1), jnp.float32),
                        pltpu.VMEM((1, c_tile, 1), jnp.float32)],
        compiler_params=pltpu.CompilerParams(
            dimension_semantics=("parallel", "arbitrary"),
            vmem_limit_bytes=int(vmem_limit)),
        cost_estimate=pl.CostEstimate(
            flops=3 * x3.size, transcendentals=C,
            bytes_accessed=x3.size * itemsize),
    )(x3, g3, b3)

    out3 = pl.pallas_call(
        _normalize_kernel,
        out_shape=jax.ShapeDtypeStruct((N, C, HW), x3.dtype),
        grid=(c_groups, k_steps),
        in_specs=[
            pl.BlockSpec(blk, x_map),
            pl.BlockSpec((1, c_tile, 1), cmap),
            pl.BlockSpec((1, c_tile, 1), cmap),
        ],
        out_specs=pl.BlockSpec(blk, x_map),
        compiler_params=pltpu.CompilerParams(
            dimension_semantics=("parallel", "parallel"),
            vmem_limit_bytes=int(vmem_limit)),
        cost_estimate=pl.CostEstimate(
            flops=2 * x3.size, transcendentals=0,
            bytes_accessed=2 * x3.size * itemsize),
    )(x3, scale, shift)
    return out3


# --------------------------------------------------------------------------
# Dispatcher
# --------------------------------------------------------------------------
def _batchlayer_impl(x, gamma, beta, total_budget):
    N, C, H, W = x.shape
    HW = H * W
    x3 = x.reshape(N, C, HW)                 # free reshape, no HBM transpose
    itemsize = jnp.dtype(x.dtype).itemsize
    gran = _granule(x.dtype)

    if C % gran == 0:
        cands = [t for t in range(gran, C + 1, gran) if C % t == 0]
    else:
        cands = [C]                          # block dim == full array dim is legal

    def fp(n_blk, ct, hw_blk):
        return _block_footprint(n_blk, ct, hw_blk, itemsize)

    # ---- Path A: full channel groups, single fused pass ----
    fit_a = [t for t in cands if fp(N, t, HW) <= total_budget]
    if fit_a:
        # keep >= 4 grid steps (>= 2 for v7x megacore) when C allows it
        target_steps = min(4, C // cands[0])
        good = [t for t in fit_a if C // t >= target_steps]
        c_tile = max(good) if good else max(fit_a)
        vmem_limit = max(fp(N, c_tile, HW), 16 << 20)
        out3 = _run_fused(x3, gamma.reshape(C, 1), beta.reshape(C, 1),
                          c_tile, vmem_limit)
        return out3.reshape(N, C, H, W)

    # ---- Path B: channel group too big -> chunked two-pass reduction ----
    c_tile = min(cands)
    g3 = gamma.reshape(1, C, 1)
    b3 = beta.reshape(1, C, 1)

    hw_divs = ([d for d in range(128, HW + 1, 128) if HW % d == 0]
               if HW % 128 == 0 else [])
    hw_fit = [d for d in hw_divs if fp(N, c_tile, d) <= total_budget]
    if hw_fit:
        hw_blk = max(hw_fit)
        vmem_limit = max(fp(N, c_tile, hw_blk), 16 << 20)
        out3 = _run_two_pass(x3, g3, b3, c_tile, True, N, hw_blk, vmem_limit)
        return out3.reshape(N, C, H, W)

    n_divs = [d for d in range(1, N + 1) if N % d == 0]
    n_fit = [d for d in n_divs if fp(d, c_tile, HW) <= total_budget]
    if n_fit:
        n_blk = max(n_fit)
        vmem_limit = max(fp(n_blk, c_tile, HW), 16 << 20)
        out3 = _run_two_pass(x3, g3, b3, c_tile, False, n_blk, HW, vmem_limit)
        return out3.reshape(N, C, H, W)

    # Last resort: one giant group, raise the limit toward the physical cap.
    # TODO(synk): element-masked HW chunking for HW % 128 != 0 with N == 1.
    cap = _vmem_capacity_bytes()
    vmem_limit = min(max(fp(N, c_tile, HW), 16 << 20), int(cap * 0.9))
    out3 = _run_fused(x3, gamma.reshape(C, 1), beta.reshape(C, 1),
                      c_tile, vmem_limit)
    return out3.reshape(N, C, H, W)


@jax.jit
def batchlayer(x, gamma, beta):
    """x: (N, C, H, W); gamma, beta: (1, C, 1, 1). Returns (N, C, H, W)."""
    return _batchlayer_impl(x, gamma, beta, _total_vmem_budget())


# --------------------------------------------------------------------------
# Reference + self-test
# --------------------------------------------------------------------------
def _reference(x, gamma, beta):
    mean = jnp.mean(x, axis=(0, 2, 3), keepdims=True)
    a = x - mean
    var = jnp.mean(a * a, axis=(0, 2, 3), keepdims=True)
    return a / jnp.sqrt(var + EPS) * gamma + beta


if __name__ == "__main__":
    key = jax.random.PRNGKey(0)
    kx, kg, kb, kx2, kg2, kb2 = jax.random.split(key, 6)

    # Test 1: the module's natural small shape (fused single-pass path).
    N, C, H, W = 2, 4, 16, 16
    x = jax.random.normal(kx, (N, C, H, W), dtype=jnp.float32)
    gamma = jax.random.uniform(kg, (1, C, 1, 1), jnp.float32, minval=-0.1, maxval=0.1)
    beta = jax.random.uniform(kb, (1, C, 1, 1), jnp.float32, minval=-0.1, maxval=0.1)

    out = batchlayer(x, gamma, beta)
    jax.block_until_ready(out)
    ref = _reference(x, gamma, beta)
    assert out.shape == (N, C, H, W)
    assert jnp.allclose(out, ref, atol=1e-5, rtol=1e-5)

    # Test 2: force the chunked two-pass fallback (Path B) with a tiny budget,
    # so the scratch-accumulator / normalize-sweep path is exercised too.
    N2, C2, H2, W2 = 2, 16, 32, 32
    x2 = jax.random.normal(kx2, (N2, C2, H2, W2), dtype=jnp.float32)
    gamma2 = jax.random.uniform(kg2, (1, C2, 1, 1), jnp.float32, minval=-0.1, maxval=0.1)
    beta2 = jax.random.uniform(kb2, (1, C2, 1, 1), jnp.float32, minval=-0.1, maxval=0.1)
    forced_budget = _block_footprint(N2, 8, H2 * W2, 4) - 1  # smallest full group just misses
    forced = jax.jit(lambda a, g, b: _batchlayer_impl(a, g, b, forced_budget))
    out2 = forced(x2, gamma2, beta2)
    jax.block_until_ready(out2)
    ref2 = _reference(x2, gamma2, beta2)
    assert jnp.allclose(out2, ref2, atol=1e-5, rtol=1e-5)

    print("KERNEL_OK")
</pallas_src>

<mosaic_0001>
module attributes {stable_mosaic.version = 11 : i64} {
  func.func @_fused_kernel(%arg0: i32, %arg1: memref<2x4x256xf32, #tpu.memory_space<vmem>>, %arg2: memref<4x1xf32, #tpu.memory_space<vmem>>, %arg3: memref<4x1xf32, #tpu.memory_space<vmem>>, %arg4: memref<2x4x256xf32, #tpu.memory_space<vmem>>) attributes {dimension_semantics = [#tpu.dimension_semantics<parallel>], iteration_bounds = array<i64: 1>, scalar_prefetch = 0 : i64, scratch_operands = 0 : i64, tpu.core_type = #tpu.core_type<tc>, window_params = [{transform_indices = @transform_0, window_bounds = array<i64: 2, 4, 256>}, {pipeline_mode = #tpu.pipeline_mode<synchronous>, transform_indices = @transform_1, window_bounds = array<i64: 4, 1>}, {pipeline_mode = #tpu.pipeline_mode<synchronous>, transform_indices = @transform_2, window_bounds = array<i64: 4, 1>}, {transform_indices = @transform_3, window_bounds = array<i64: 2, 4, 256>}]} {
    %c0 = arith.constant 0 : index
    %c0_0 = arith.constant 0 : index
    %c0_1 = arith.constant 0 : index
    %0 = vector.load %arg1[%c0, %c0_0, %c0_1] : memref<2x4x256xf32, #tpu.memory_space<vmem>>, vector<2x4x256xf32>
    %cst = arith.constant dense<0.000000e+00> : vector<4xf32>
    %1 = vector.multi_reduction <add>, %0, %cst [0, 2] : vector<2x4x256xf32> to vector<4xf32>
    %2 = vector.shape_cast %1 : vector<4xf32> to vector<1x4x1xf32>
    %3 = arith.mulf %0, %0 : vector<2x4x256xf32>
    %cst_2 = arith.constant dense<0.000000e+00> : vector<4xf32>
    %4 = vector.multi_reduction <add>, %3, %cst_2 [0, 2] : vector<2x4x256xf32> to vector<4xf32>
    %5 = vector.shape_cast %4 : vector<4xf32> to vector<1x4x1xf32>
    %cst_3 = arith.constant 0.001953125 : f32
    %6 = vector.broadcast %cst_3 : f32 to vector<1x4x1xf32>
    %7 = arith.mulf %2, %6 : vector<1x4x1xf32>
    %cst_4 = arith.constant 0.001953125 : f32
    %8 = vector.broadcast %cst_4 : f32 to vector<1x4x1xf32>
    %9 = arith.mulf %5, %8 : vector<1x4x1xf32>
    %10 = arith.mulf %7, %7 : vector<1x4x1xf32>
    %11 = arith.subf %9, %10 : vector<1x4x1xf32>
    %cst_5 = arith.constant 0.000000e+00 : f32
    %12 = vector.broadcast %cst_5 : f32 to vector<1x4x1xf32>
    %13 = arith.maximumf %11, %12 : vector<1x4x1xf32>
    %cst_6 = arith.constant 9.99999974E-6 : f32
    %14 = vector.broadcast %cst_6 : f32 to vector<1x4x1xf32>
    %15 = arith.addf %13, %14 : vector<1x4x1xf32>
    %16 = math.rsqrt %15 : vector<1x4x1xf32>
    %c0_7 = arith.constant 0 : index
    %c0_8 = arith.constant 0 : index
    %17 = vector.load %arg2[%c0_7, %c0_8] : memref<4x1xf32, #tpu.memory_space<vmem>>, vector<4x1xf32>
    %c0_9 = arith.constant 0 : index
    %c0_10 = arith.constant 0 : index
    %18 = vector.load %arg3[%c0_9, %c0_10] : memref<4x1xf32, #tpu.memory_space<vmem>>, vector<4x1xf32>
    %19 = vector.shape_cast %17 : vector<4x1xf32> to vector<1x4x1xf32>
    %20 = vector.shape_cast %18 : vector<4x1xf32> to vector<1x4x1xf32>
    %21 = arith.mulf %16, %19 : vector<1x4x1xf32>
    %22 = arith.mulf %7, %21 : vector<1x4x1xf32>
    %23 = arith.subf %20, %22 : vector<1x4x1xf32>
    %24 = vector.broadcast %21 : vector<1x4x1xf32> to vector<2x4x256xf32>
    %25 = arith.mulf %0, %24 : vector<2x4x256xf32>
    %26 = vector.broadcast %23 : vector<1x4x1xf32> to vector<2x4x256xf32>
    %27 = arith.addf %25, %26 : vector<2x4x256xf32>
    %c0_11 = arith.constant 0 : index
    %c0_12 = arith.constant 0 : index
    %c0_13 = arith.constant 0 : index
    %28 = vector.load %arg4[%c0_11, %c0_12, %c0_13] : memref<2x4x256xf32, #tpu.memory_space<vmem>>, vector<2x4x256xf32>
    tpu.vector_store %arg4[%c0_11, %c0_12, %c0_13], %27 {strides = array<i32>} : memref<2x4x256xf32, #tpu.memory_space<vmem>>, vector<2x4x256xf32>,
    return
  }
  func.func @transform_0(%arg0: i32) -> (i32, i32, i32) {
    %c0_i32 = arith.constant 0 : i32
    %c0_i32_0 = arith.constant 0 : i32
    %c0_i32_1 = arith.constant 0 : i32
    return %c0_i32, %arg0, %c0_i32_0 : i32, i32, i32
  }
  func.func @transform_1(%arg0: i32) -> (i32, i32) {
    %c0_i32 = arith.constant 0 : i32
    %c0_i32_0 = arith.constant 0 : i32
    %c0_i32_1 = arith.constant 0 : i32
    return %c0_i32, %c0_i32_0 : i32, i32
  }
  func.func @transform_2(%arg0: i32) -> (i32, i32) {
    %c0_i32 = arith.constant 0 : i32
    %c0_i32_0 = arith.constant 0 : i32
    %c0_i32_1 = arith.constant 0 : i32
    return %c0_i32, %c0_i32_0 : i32, i32
  }
  func.func @transform_3(%arg0: i32) -> (i32, i32, i32) {
    %c0_i32 = arith.constant 0 : i32
    %c0_i32_0 = arith.constant 0 : i32
    %c0_i32_1 = arith.constant 0 : i32
    return %c0_i32, %arg0, %c0_i32_0 : i32, i32, i32
  }
}

</mosaic_0001>

<bundles_post_ra>
// kernel: batchlayer.1
= control target key start
LH: loop header
LB: loop body
LE: loop exit
PB: predicated region body
PF: predicated region fallthrough
CT: control target
= control target key end

     0   :  { %vm22_vm0 = vcmask 1043456   ;;  %v103_v22 = vmov 0   ;;  %v104_v37 = vmov 839922192   ;;  %v68_v39 = vlaneseq  ;;  %s151_s0 = inlined_call_operand.vmem [shape: f32[2,4,256], index: 0, kind: input, shape index: {}]   ;;  %s152_s1 = inlined_call_operand.vmem [shape: f32[4,1], index: 1, kind: input, shape index: {}]   ;;  %s153_s2 = inlined_call_operand.vmem [shape: f32[4,1], index: 2, kind: input, shape index: {}]   ;;  %s154_s3 = inlined_call_operand.vmem [shape: f32[2,4,256], index: 3, kind: output, shape index: {}]  }
   0x1   :  { %v14_v0 = vld [vmem:[%s151_s0] sm:$0xff]  ;;  %v15_v1 = vld [vmem:[%s151_s0 + $0x8] sm:$0xff]  ;;  %97 = vset.pattern.permute.xlu1 %v103_v22  ;;  %98 = vset.pattern.permute.xlu0 %v103_v22  ;;  %v66_v38 = vunpack.c.l.s4 %v104_v37 }
   0x2   :  { %v18_v2 = vcombine.high %v14_v0, %v14_v0  ;;  %v19_v3 = vcombine.high %v15_v1, %v15_v1  ;;  %v23_v4 = vsel %vm22_vm0, %v14_v0, 0.0  ;;  %v32_v5 = vmul.f32 %v14_v0, %v14_v0  ;;  %v56_v31 = vld [vmem:[%s152_s1] sm:$0xf] }
   0x3   :  { %v33_v6 = vmul.f32 %v15_v1, %v15_v1  ;;  %v26_v8 = vsel %vm22_vm0, %v15_v1, 0.0  ;;  %v57_v34 = vld [vmem:[%s153_s2] sm:$0xf]  ;;  %v67_v40 = vunpack.c.0.s8 %v66_v38  ;;  %v69_v41 = vshrl.u32 %v68_v39, 7 }
   0x4   :  { %v24_v7 = vsel %vm22_vm0, %v18_v2, 0.0  ;;  %v36_v10 = vcombine.high %v32_v5, %v32_v5  ;;  %v40_v12 = vsel %vm22_vm0, %v32_v5, 0.0  ;;  %v28_v13 = vsel %vm22_vm0, %v19_v3, 0.0 }
   0x5   :  { %v25_v9 = vadd.f32 %v24_v7, %v23_v4  ;;  %v37_v11 = vcombine.high %v33_v6, %v33_v6  ;;  %v43_v16 = vsel %vm22_vm0, %v33_v6, 0.0  ;;  %v70_v42 = vsub.s32 %v67_v40, %v69_v41 }
   0x6   :  { %v41_v15 = vsel %vm22_vm0, %v36_v10, 0.0 }
   0x7   :  { %v27_v14 = vadd.f32 %v26_v8, %v25_v9  ;;  %v42_v17 = vadd.f32 %v41_v15, %v40_v12  ;;  %v45_v19 = vsel %vm22_vm0, %v37_v11, 0.0 }
   0x9   :  { %v29_v18 = vadd.f32 %v28_v13, %v27_v14  ;;  %v44_v20 = vadd.f32 %v43_v16, %v42_v17 }
   0xb   :  { %30 = vadd.xlane.f32.xlu0 %v29_v18  ;;  %v46_v21 = vadd.f32 %v45_v19, %v44_v20 }
   0xf   :  { %47 = vadd.xlane.f32.xlu0 %v46_v21 }
  0x98   :  { %v31_v23 = vpop.xlane.xlu0 %30 }
  0x99   :  { %v49_v24 = vmul.f32 0.001953125, %v31_v23 }
  0x9b   :  { %v51_v26 = vmul.f32 %v49_v24, %v49_v24 }
  0x9c   :  { %v48_v25 = vpop.xlane.xlu0 %47 }
  0x9d   :  { %v50_v27 = vmul.f32 0.001953125, %v48_v25 }
  0x9f   :  { %v52_v28 = vsub.f32 %v50_v27, %v51_v26 }
  0xa1   :  { %v53_v29 = vmax.f32 %v52_v28, 0.0 }
  0xa3   :  { %v54_v30 = vadd.f32 1e-05, %v53_v29 }
  0xa5   :  { %101 = vrsqrt.f32 %v54_v30 }
  0xaf   :  { %v102_v32 = vpop.eup %101 }
  0xb0   :  { %v58_v33 = vmul.f32 %v102_v32, %v56_v31 }
  0xb2   :  { %63 = vperm.xlu1 %97, %v58_v33   ;;  %v59_v35 = vmul.f32 %v58_v33, %v49_v24 }
  0xb4   :  { %v60_v36 = vsub.f32 %v57_v34, %v59_v35 }
  0xb6   :  { %77 = vperm.xlu1 %97, %v60_v36  }
 0x131   :  { %v64_v43 = vpop.permute.xlu1 %63 }
 0x132   :  { %v71_v44 = vrot.slane %v64_v43, %v70_v42 }
 0x134   :  { %v73_v46 = vmul.f32 %v71_v44, %v14_v0  ;;  %v74_v47 = vmul.f32 %v71_v44, %v15_v1 }
 0x135   :  { %v78_v45 = vpop.permute.xlu1 %77 }
 0x136   :  { %v85_v48 = vrot.slane %v78_v45, %v70_v42 }
 0x138   :  { %v87_v49 = vadd.f32 %v85_v48, %v73_v46  ;;  %v88_v50 = vadd.f32 %v85_v48, %v74_v47 }
 0x13a   :  { %89 = vst [vmem:[%s154_s3] sm:$0xff] %v87_v49  ;;  %90 = vst [vmem:[%s154_s3 + $0x8] sm:$0xff] %v88_v50 }

</bundles_post_ra>
